<compile_context>
chip_gen: v6e
topology: v6e:2x2x1
jax: 0.10.0
libtpu: 0.0.40
codegen_flags: <defaults>
</compile_context>

<pallas_src>
import jax
import jax.numpy as jnp
from jax import lax
from jax.experimental import pallas as pl
from jax.experimental.pallas import tpu as pltpu

NEG_BIG = -1e30  # fill for padded vocab columns; behaves like -inf in softmax


def _cbow_logits_kernel(ctx_ref,     # (TB, D)  f32   VMEM: mean context vectors
                        w_ref,       # (TV, D)  bf16  VMEM: streamed weight tile
                        b_ref,       # (1, TV)  f32   VMEM: streamed bias tile
                        logits_ref,  # (TB, TV) f32   HBM-bound raw logit tile
                        lse_ref,     # (TB, 1)  f32   per-row log-sum-exp (last tile)
                        m_sc,        # (TB, 1)  f32   running max
                        l_sc):       # (TB, 1)  f32   running sum-exp
    j = pl.program_id(1)
    nv = pl.num_programs(1)

    @pl.when(j == 0)
    def _init():
        m_sc[...] = jnp.full(m_sc.shape, -jnp.inf, m_sc.dtype)
        l_sc[...] = jnp.zeros(l_sc.shape, l_sc.dtype)

    # logits_tile = ctx @ W_tile^T + b_tile ; weight keeps its PyTorch (V, D)
    # layout, contraction expressed on D.  LHS cast to bf16 in-register (tiny)
    # so the MXU runs its fast bf16 path with f32 accumulation.
    logits = lax.dot_general(
        ctx_ref[...].astype(jnp.bfloat16), w_ref[...],
        dimension_numbers=(((1,), (1,)), ((), ())),
        preferred_element_type=jnp.float32) + b_ref[...]          # (TB, TV) f32

    # Online log-sum-exp over the vocab axis (EUP work hides under weight DMA).
    m_prev = m_sc[...]
    m_new = jnp.maximum(m_prev, jnp.max(logits, axis=-1, keepdims=True))
    l_sc[...] = (l_sc[...] * jnp.exp(m_prev - m_new)
                 + jnp.sum(jnp.exp(logits - m_new), axis=-1, keepdims=True))
    m_sc[...] = m_new

    # Stream the raw logit tile straight out (lane-dense, tile_v-wide store).
    logits_ref[...] = logits

    @pl.when(j == nv - 1)
    def _finalize():
        lse_ref[...] = m_sc[...] + jnp.log(l_sc[...])


def _normalize_kernel(logits_ref,    # (TB, TV) f32
                      lse_ref,       # (TB, 1)  f32
                      out_ref):      # (TB, TV) f32
    out_ref[...] = logits_ref[...] - lse_ref[...]


def prepare_cbow_params(embedding_table, linear_weight, linear_bias, *, tile_v=1024):
    """One-time parameter prep (cast/pad).  Keep OUT of the per-step hot path.
    Padded vocab columns get zero weights and a -1e30 bias (softmax-neutral);
    padding must stay at the high end of the vocab axis."""
    v, d = embedding_table.shape
    v_pad = pl.cdiv(v, tile_v) * tile_v
    emb = embedding_table.astype(jnp.float32)                     # stays in HBM
    w_pad = jnp.zeros((v_pad, d), jnp.bfloat16).at[:v, :].set(
        linear_weight.astype(jnp.bfloat16))                       # (V_pad, D), no transpose
    bias_pad = jnp.full((1, v_pad), NEG_BIG, jnp.float32).at[0, :v].set(
        linear_bias.astype(jnp.float32))                          # (1, V_pad)
    return emb, w_pad, bias_pad


def cbow_forward(context_words, emb, w_pad, bias_pad, *, tile_v=1024, tile_b=8):
    """context_words: (B, C) int; emb: (V, D) f32; w_pad: (V_pad, D) bf16;
    bias_pad: (1, V_pad) f32.  Returns (B, V) f32 log-probabilities.
    For throughput, call with B >= 128-256 (weight stream is amortized by B)."""
    batch, _context = context_words.shape
    v, d = emb.shape
    v_pad = w_pad.shape[0]
    nv = v_pad // tile_v

    # Embedding gather + context mean hoisted to XLA (only B*C*D bytes).
    # NOTE: ids are clamped; PyTorch Embedding would raise on out-of-range ids.
    ids = jnp.clip(context_words.astype(jnp.int32), 0, v - 1)
    ctx = jnp.mean(emb[ids], axis=1).astype(jnp.float32)          # (B, D) f32

    # Pad batch to a multiple of the batch block (sublane alignment).
    batch_pad = pl.cdiv(batch, tile_b) * tile_b
    if batch_pad != batch:
        ctx = jnp.pad(ctx, ((0, batch_pad - batch), (0, 0)))
    nb = batch_pad // tile_b

    grid_spec = pltpu.PrefetchScalarGridSpec(
        num_scalar_prefetch=0,
        grid=(nb, nv),                                   # vocab (reduction) axis last
        in_specs=[
            pl.BlockSpec((tile_b, d), lambda i, j: (i, 0)),     # ctx block (f32)
            pl.BlockSpec((tile_v, d), lambda i, j: (j, 0)),     # weight tile (bf16)
            pl.BlockSpec((1, tile_v), lambda i, j: (0, j)),     # bias tile
        ],
        out_specs=[
            pl.BlockSpec((tile_b, tile_v), lambda i, j: (i, j)),  # raw logits -> HBM
            pl.BlockSpec((tile_b, 1), lambda i, j: (i, 0)),       # per-row LSE
        ],
        scratch_shapes=[
            pltpu.VMEM((tile_b, 1), jnp.float32),   # running max
            pltpu.VMEM((tile_b, 1), jnp.float32),   # running sum-exp
        ],
    )

    logits_pad, lse = pl.pallas_call(
        _cbow_logits_kernel,
        out_shape=(jax.ShapeDtypeStruct((batch_pad, v_pad), jnp.float32),
                   jax.ShapeDtypeStruct((batch_pad, 1), jnp.float32)),
        grid_spec=grid_spec,
        compiler_params=pltpu.CompilerParams(
            # batch blocks are independent (megacore-shardable on v7x);
            # the vocab axis carries the log-sum-exp reduction.
            dimension_semantics=("parallel", "arbitrary")),
        cost_estimate=pl.CostEstimate(
            flops=2 * batch_pad * v_pad * d,
            transcendentals=batch_pad * v_pad,
            bytes_accessed=(v_pad * d * 2 + v_pad * 4
                            + batch_pad * d * 4 + batch_pad * v_pad * 4)),
    )(ctx, w_pad, bias_pad)

    # Cheap follow-up pass: log_probs = logits - lse (both grid axes parallel).
    log_probs_pad = pl.pallas_call(
        _normalize_kernel,
        out_shape=jax.ShapeDtypeStruct((batch_pad, v_pad), jnp.float32),
        grid_spec=pltpu.PrefetchScalarGridSpec(
            num_scalar_prefetch=0,
            grid=(nb, nv),
            in_specs=[
                pl.BlockSpec((tile_b, tile_v), lambda i, j: (i, j)),
                pl.BlockSpec((tile_b, 1), lambda i, j: (i, 0)),
            ],
            out_specs=pl.BlockSpec((tile_b, tile_v), lambda i, j: (i, j)),
        ),
        compiler_params=pltpu.CompilerParams(
            dimension_semantics=("parallel", "parallel")),
    )(logits_pad, lse)

    return log_probs_pad[:batch, :v]


def cbow_reference(context_words, embedding_table, linear_weight, linear_bias):
    embedded = embedding_table[context_words]            # (B, C, D)
    ctx = embedded.mean(axis=1)                          # (B, D)
    logits = ctx @ linear_weight.T + linear_bias         # (B, V)
    return jax.nn.log_softmax(logits, axis=-1)


if __name__ == "__main__":
    # Small deterministic shapes consistent with the module (real model uses
    # V ~ 30k BERT vocab, D = 300).  V = 2000 pads to 2048 -> 2 vocab tiles at
    # tile_v = 1024, exercising the online-LSE / padded-column paths; D = 300
    # exercises the unaligned-lane (300 -> 384) path.  B = 16 with tile_b = 8
    # exercises the batch-parallel grid axis while staying small.
    vocab_size = 2000
    embedding_dim = 300
    batch = 16
    context = 4
    tile_v = 1024
    tile_b = 8

    key = jax.random.PRNGKey(0)
    k_emb, k_w, k_b, k_idx = jax.random.split(key, 4)

    embedding_table = jax.random.normal(k_emb, (vocab_size, embedding_dim), jnp.float32)
    bound = 1.0 / (embedding_dim ** 0.5)
    linear_weight = jax.random.uniform(
        k_w, (vocab_size, embedding_dim), jnp.float32, -bound, bound)
    linear_bias = jax.random.uniform(k_b, (vocab_size,), jnp.float32, -bound, bound)
    context_words = jax.random.randint(
        k_idx, (batch, context), 0, vocab_size, jnp.int32)

    # One-time prep (bf16 cast + vocab padding), then the streamed kernel calls.
    emb, w_pad, bias_pad = prepare_cbow_params(
        embedding_table, linear_weight, linear_bias, tile_v=tile_v)
    out = cbow_forward(context_words, emb, w_pad, bias_pad,
                       tile_v=tile_v, tile_b=tile_b)
    out = jax.block_until_ready(out)

    ref = cbow_reference(context_words, embedding_table, linear_weight, linear_bias)
    assert out.shape == (batch, vocab_size)
    err = float(jnp.max(jnp.abs(out - ref)))
    # bf16 weight stream -> expect ~1e-3..1e-2 logit-level differences vs f32 ref.
    assert err < 5e-2, f"max abs err {err}"

    print("KERNEL_OK")
</pallas_src>

<mosaic_0001>
module attributes {stable_mosaic.version = 11 : i64} {
  func.func @_cbow_logits_kernel(%arg0: i32, %arg1: i32, %arg2: memref<8x300xf32, #tpu.memory_space<vmem>>, %arg3: memref<1024x300xbf16, #tpu.memory_space<vmem>>, %arg4: memref<1x1024xf32, #tpu.memory_space<vmem>>, %arg5: memref<8x1024xf32, #tpu.memory_space<vmem>>, %arg6: memref<8x1xf32, #tpu.memory_space<vmem>>, %arg7: memref<8x1xf32, #tpu.memory_space<vmem>>, %arg8: memref<8x1xf32, #tpu.memory_space<vmem>>) attributes {dimension_semantics = [#tpu.dimension_semantics<parallel>, #tpu.dimension_semantics<arbitrary>], iteration_bounds = array<i64: 2, 2>, scalar_prefetch = 0 : i64, scratch_operands = 2 : i64, tpu.core_type = #tpu.core_type<tc>, window_params = [{transform_indices = @transform_0, window_bounds = array<i64: 8, 300>}, {transform_indices = @transform_1, window_bounds = array<i64: 1024, 300>}, {transform_indices = @transform_2, window_bounds = array<i64: 1, 1024>}, {transform_indices = @transform_3, window_bounds = array<i64: 8, 1024>}, {transform_indices = @transform_4, window_bounds = array<i64: 8, 1>}]} {
    %c0_i32 = arith.constant 0 : i32
    %0 = arith.cmpi eq, %arg1, %c0_i32 : i32
    %1 = arith.extui %0 : i1 to i32
    %c0_i32_0 = arith.constant 0 : i32
    %2 = arith.cmpi ne, %1, %c0_i32_0 : i32
    scf.if %2 {
      %cst_19 = arith.constant 0xFF800000 : f32
      %30 = vector.broadcast %cst_19 : f32 to vector<8x1xf32>
      %c0_20 = arith.constant 0 : index
      %c0_21 = arith.constant 0 : index
      %31 = vector.load %arg7[%c0_20, %c0_21] : memref<8x1xf32, #tpu.memory_space<vmem>>, vector<8x1xf32>
      tpu.vector_store %arg7[%c0_20, %c0_21], %30 {strides = array<i32>} : memref<8x1xf32, #tpu.memory_space<vmem>>, vector<8x1xf32>,
      %cst_22 = arith.constant 0.000000e+00 : f32
      %32 = vector.broadcast %cst_22 : f32 to vector<8x1xf32>
      %c0_23 = arith.constant 0 : index
      %c0_24 = arith.constant 0 : index
      %33 = vector.load %arg8[%c0_23, %c0_24] : memref<8x1xf32, #tpu.memory_space<vmem>>, vector<8x1xf32>
      tpu.vector_store %arg8[%c0_23, %c0_24], %32 {strides = array<i32>} : memref<8x1xf32, #tpu.memory_space<vmem>>, vector<8x1xf32>,
    } else {
    }
    %c0 = arith.constant 0 : index
    %c0_1 = arith.constant 0 : index
    %3 = vector.load %arg2[%c0, %c0_1] : memref<8x300xf32, #tpu.memory_space<vmem>>, vector<8x300xf32>
    %4 = arith.truncf %3 : vector<8x300xf32> to vector<8x300xbf16>
    %c0_2 = arith.constant 0 : index
    %c0_3 = arith.constant 0 : index
    %5 = vector.load %arg3[%c0_2, %c0_3] : memref<1024x300xbf16, #tpu.memory_space<vmem>>, vector<1024x300xbf16>
    %cst = arith.constant dense<0.000000e+00> : vector<8x1024xf32>
    %6 = tpu.matmul %4, %5, %cst {dimension_numbers = #tpu.dot_dimension_numbers<[1], [1], [0], [0], [0, 0, 1, 0], [], []>} : vector<8x300xbf16>, vector<1024x300xbf16>, vector<8x1024xf32> -> vector<8x1024xf32>
    %c0_4 = arith.constant 0 : index
    %c0_5 = arith.constant 0 : index
    %7 = vector.load %arg4[%c0_4, %c0_5] : memref<1x1024xf32, #tpu.memory_space<vmem>>, vector<1x1024xf32>
    %8 = vector.broadcast %7 : vector<1x1024xf32> to vector<8x1024xf32>
    %9 = arith.addf %6, %8 : vector<8x1024xf32>
    %c0_6 = arith.constant 0 : index
    %c0_7 = arith.constant 0 : index
    %10 = vector.load %arg7[%c0_6, %c0_7] : memref<8x1xf32, #tpu.memory_space<vmem>>, vector<8x1xf32>
    %cst_8 = arith.constant dense<0xFF800000> : vector<8xf32>
    %11 = vector.multi_reduction <maximumf>, %9, %cst_8 [1] : vector<8x1024xf32> to vector<8xf32>
    %12 = vector.shape_cast %11 : vector<8xf32> to vector<8x1xf32>
    %13 = arith.maximumf %10, %12 : vector<8x1xf32>
    %c0_9 = arith.constant 0 : index
    %c0_10 = arith.constant 0 : index
    %14 = vector.load %arg8[%c0_9, %c0_10] : memref<8x1xf32, #tpu.memory_space<vmem>>, vector<8x1xf32>
    %15 = arith.subf %10, %13 : vector<8x1xf32>
    %16 = math.exp %15 : vector<8x1xf32>
    %17 = arith.mulf %14, %16 : vector<8x1xf32>
    %18 = vector.broadcast %13 : vector<8x1xf32> to vector<8x1024xf32>
    %19 = arith.subf %9, %18 : vector<8x1024xf32>
    %20 = math.exp %19 : vector<8x1024xf32>
    %cst_11 = arith.constant dense<0.000000e+00> : vector<8xf32>
    %21 = vector.multi_reduction <add>, %20, %cst_11 [1] : vector<8x1024xf32> to vector<8xf32>
    %22 = vector.shape_cast %21 : vector<8xf32> to vector<8x1xf32>
    %23 = arith.addf %17, %22 : vector<8x1xf32>
    %c0_12 = arith.constant 0 : index
    %c0_13 = arith.constant 0 : index
    %24 = vector.load %arg8[%c0_12, %c0_13] : memref<8x1xf32, #tpu.memory_space<vmem>>, vector<8x1xf32>
    tpu.vector_store %arg8[%c0_12, %c0_13], %23 {strides = array<i32>} : memref<8x1xf32, #tpu.memory_space<vmem>>, vector<8x1xf32>,
    %c0_14 = arith.constant 0 : index
    %c0_15 = arith.constant 0 : index
    %25 = vector.load %arg7[%c0_14, %c0_15] : memref<8x1xf32, #tpu.memory_space<vmem>>, vector<8x1xf32>
    tpu.vector_store %arg7[%c0_14, %c0_15], %13 {strides = array<i32>} : memref<8x1xf32, #tpu.memory_space<vmem>>, vector<8x1xf32>,
    %c0_16 = arith.constant 0 : index
    %c0_17 = arith.constant 0 : index
    %26 = vector.load %arg5[%c0_16, %c0_17] : memref<8x1024xf32, #tpu.memory_space<vmem>>, vector<8x1024xf32>
    tpu.vector_store %arg5[%c0_16, %c0_17], %9 {strides = array<i32>} : memref<8x1024xf32, #tpu.memory_space<vmem>>, vector<8x1024xf32>,
    %c1_i32 = arith.constant 1 : i32
    %27 = arith.cmpi eq, %arg1, %c1_i32 : i32
    %28 = arith.extui %27 : i1 to i32
    %c0_i32_18 = arith.constant 0 : i32
    %29 = arith.cmpi ne, %28, %c0_i32_18 : i32
    scf.if %29 {
      %c0_19 = arith.constant 0 : index
      %c0_20 = arith.constant 0 : index
      %30 = vector.load %arg7[%c0_19, %c0_20] : memref<8x1xf32, #tpu.memory_space<vmem>>, vector<8x1xf32>
      %c0_21 = arith.constant 0 : index
      %c0_22 = arith.constant 0 : index
      %31 = vector.load %arg8[%c0_21, %c0_22] : memref<8x1xf32, #tpu.memory_space<vmem>>, vector<8x1xf32>
      %32 = math.log %31 : vector<8x1xf32>
      %33 = arith.addf %30, %32 : vector<8x1xf32>
      %c0_23 = arith.constant 0 : index
      %c0_24 = arith.constant 0 : index
      %34 = vector.load %arg6[%c0_23, %c0_24] : memref<8x1xf32, #tpu.memory_space<vmem>>, vector<8x1xf32>
      tpu.vector_store %arg6[%c0_23, %c0_24], %33 {strides = array<i32>} : memref<8x1xf32, #tpu.memory_space<vmem>>, vector<8x1xf32>,
    } else {
    }
    return
  }
  func.func @transform_0(%arg0: i32, %arg1: i32) -> (i32, i32) {
    %c0_i32 = arith.constant 0 : i32
    %c0_i32_0 = arith.constant 0 : i32
    return %arg0, %c0_i32 : i32, i32
  }
  func.func @transform_1(%arg0: i32, %arg1: i32) -> (i32, i32) {
    %c0_i32 = arith.constant 0 : i32
    %c0_i32_0 = arith.constant 0 : i32
    return %arg1, %c0_i32 : i32, i32
  }
  func.func @transform_2(%arg0: i32, %arg1: i32) -> (i32, i32) {
    %c0_i32 = arith.constant 0 : i32
    %c0_i32_0 = arith.constant 0 : i32
    return %c0_i32, %arg1 : i32, i32
  }
  func.func @transform_3(%arg0: i32, %arg1: i32) -> (i32, i32) {
    %c0_i32 = arith.constant 0 : i32
    return %arg0, %arg1 : i32, i32
  }
  func.func @transform_4(%arg0: i32, %arg1: i32) -> (i32, i32) {
    %c0_i32 = arith.constant 0 : i32
    %c0_i32_0 = arith.constant 0 : i32
    return %arg0, %c0_i32 : i32, i32
  }
}

</mosaic_0001>

<bundles_post_ra>
// kernel: tpu_custom_call.1
= control target key start
LH: loop header
LB: loop body
LE: loop exit
PB: predicated region body
PF: predicated region fallthrough
CT: control target
= control target key end

     0   :  { %10 = vsyncpa [#allocation5], 0  ;;  %s3582_s0 = inlined_call_operand.vmem [shape: f32[16,300], index: 0, kind: input, shape index: {}]   ;;  %s3583_s1 = inlined_call_operand.vmem [shape: bf16[2048,300], index: 1, kind: input, shape index: {}]   ;;  %s3584_s2 = inlined_call_operand.vmem [shape: f32[1,2048], index: 2, kind: input, shape index: {}]   ;;  %s3585_s3 = inlined_call_operand.hbm [shape: f32[16,2048], index: 3, kind: output, shape index: {0}]   ;;  %s3586_s4 = inlined_call_operand.vmem [shape: f32[16,1], index: 4, kind: output, shape index: {1}]  }
   0x1   :  { %12 = vsyncpa [#allocation5 + $0x1], 0  ;;  %s3075_s15 = smov 0   ;;  %s3077_s16 = smov 0  }
   0x2   :  { %s3079_s17 = smov 0   ;;  %s3081_s18 = smov 0  }
   0x3   :  { %s3083_s19 = smov 0   ;;  %s3085_s20 = smov 0  }
   0x4   :  { %s3087_s21 = smov 0   ;;  %s3089_s22 = smov 0  }
   0x5 LB: > { %3592 = sst [smem:[#allocation7_spill]] %s3036_s20  ;;  %s2280_s23 = sadd.s32 4294967295, %s3044_s22   ;;  %s3044_s22 = sphi %s3089_s22, %s18_s22   ;;  %s3040_s21 = sphi %s3087_s21, %s3604_s21   ;;  %s3036_s20 = sphi %s3085_s20, %s3603_s20   ;;  %s3032_s19 = sphi %s3083_s19, %s3602_s19   ;;  %s3028_s18 = sphi %s3081_s18, %s3601_s18   ;;  %s3024_s17 = sphi %s3079_s17, %s3607_s17   ;;  %s3020_s16 = sphi %s3077_s16, %s3606_s16   ;;  %s3016_s15 = sphi %s3075_s15, %s3605_s15  }
   0x6   : > { %3593 = sst [smem:[#allocation8_spill]] %s3040_s21  ;;  %s2281_s24 = sadd.s32 4294967294, %s3044_s22  }
   0x7   : > { %s27_s25 = sadd.s32 1, %s3036_s20  ;;  %s30_s26 = sadd.s32 1, %s3040_s21 }
   0x8   : > { %p28_p0 = scmp.ge.s32.totalorder %s27_s25, 2  ;;  %p127_p1 = scmp.ne.s32.totalorder %s3024_s17, %s3020_s16 }
   0x9   : > { %p128_p2 = scmp.eq.s32.totalorder %s2280_s23, 3  ;;  %p133_p5 = scmp.ne.s32.totalorder %s3020_s16, %s3016_s15 }
   0xa   : > { %s3609_s25 = smov (%p28_p0, %s27_s25), 0  ;;  %s3611_s26 = smov (!%p28_p0, %s30_s26), %s3040_s21 }
   0xb   : > { %3594 = sst [smem:[#allocation9_spill]] %s3609_s25  ;;  %s113_s27 = ssub.s32 %s3036_s20, %s3609_s25 }
   0xc   : > { %p3126_p3 = por %p128_p2, %p127_p1  ;;  %p32_p4 = scmp.ge.s32.totalorder %s3611_s26, 2 }
   0xd   : > { %p134_p6 = scmp.eq.s32.totalorder %s2281_s24, 3  ;;  %p2284_p7 = scmp.ge.s32.totalorder %s3044_s22, 1 }
   0xe   : > { %s3613_s26 = smov (%p32_p4, %s3611_s26), 0  ;;  %p204_p9 = scmp.lt.s32.totalorder %s3044_s22, 5 }
   0xf   : > { %3596 = sst [smem:[#allocation10_spill]] %s3613_s26  ;;  %p3135_p8 = por %p134_p6, %p133_p5 }
  0x10   : > { %s112_s30 = ssub.s32 %s3040_s21, %s3613_s26  ;;  %s117_s5 = sadd.s32 1, %s3024_s17 }
  0x11   : > { %s114_s6 = sor.u32 %s113_s27, %s112_s30  ;;  %p205_p10 = pnand %p2284_p7, %p204_p9 }
  0x12   : > { %p115_p11 = scmp.eq.s32.totalorder %s114_s6, 0  ;;  %s3587_s8 = sand.u32 (!%p205_p10), 1, %s3020_s16  }
  0x13   : > { %208 = sbr.rel (%p205_p10) target bundleno = 1117 (0x45d), region = 32  ;;  %p244_p12 = scmp.lt.s32.totalorder (!%p205_p10), %s3032_s19, 1 }
  0x14   : > { %s3144_s7 = scalar_select %p115_p11, %s3024_s17, %s117_s5  }
  0x15   : > { %s2285_s9 = sshll.u32 (!%p205_p10), %s3587_s8, 6  ;;  %s2287_s10 = sshll.u32 (!%p205_p10), %s3028_s18, 7 }
  0x16   : > { %3598 = sst [smem:[#allocation11_spill]] %s3144_s7  ;;  %p250_p13 = scmp.lt.s32.totalorder (!%p205_p10), %s2287_s10, 255 }
  0x17   : > { %s3153_s13 = sshll.u32 (!%p205_p10), %s3028_s18, 3  ;;  %p2291_p1 = scmp.ne.s32.totalorder (!%p205_p10), %s3028_s18, 0 }
  0x18   : > { %s245_s11 = scalar_select %p244_p12, %s3032_s19, 1 }
  0x19   : > { %s3615_s10 = smov (!%p250_p13, %s2287_s10), 255  ;;  %p257_p0 = scmp.lt.s32.totalorder %s3153_s13, 15 }
  0x1a   : > { %s2599_s12 = smul.u32 24, %s245_s11  ;;  %s2290_s30 = sshll.u32 %s245_s11, 3 }
  0x1b   : > { %s2600_s14 = smul.u32 12, %s3615_s10  ;;  %s3169_s21 = scalar_lea.vmem %s3586_s4, %s2290_s30 }
  0x1c   : > { %s3159_s27 = scalar_lea.vmem %s3582_s0, %s2599_s12  ;;  %s3178_s12 = scalar_lea.vmem [#allocation4], %s2285_s9 }
  0x1d   : > { %s3164_s8 = scalar_lea.vmem %s3583_s1, %s2600_s14  ;;  %270 = sbr.rel (%p2291_p1) target bundleno = 36 (0x24), region = 36 }
  0x1e   : > { %s3172_s20 = scalar_select %p257_p0, %s3153_s13, 15 }
  0x20   : > { %s259_s23 = scalar_lea.vmem %s3584_s2, %s3172_s20 }
  0x22   : > { %vm271_vm0 = vcmask 7168   ;;  %v3046_v0 = vmov -inf   ;;  %v3047_v1 = vmov 0.0  }
  0x23   : > { %272 = vst.msk [vmem:[#allocation2] sm:$0xff] %vm271_vm0, %v3046_v0  ;;  %273 = vst.msk [vmem:[#allocation3] sm:$0xff] %vm271_vm0, %v3047_v1 }
  0x24 PF: > { %v2676_v2 = vld [vmem:[%s3164_s8 + $0xac] ss:$12 sps:$4 sm:$0xff]   ;;  %vm1538_vm1 = vcmask 359424   ;;  %v2678_v3 = vld [vmem:[%s3164_s8 + $0x170] ss:$12 sps:$4 sm:$0xff]   ;;  %vm2117_vm2 = vcmask 7168  }
  0x25   : > { %1734 = vmatprep.subr.bf16.mxu0 %v2676_v2  ;;  %v2679_v4 = vld [vmem:[%s3164_s8 + $0xa8] ss:$12 sps:$4 sm:$0xff]   ;;  %2567 = vmatprep.subr.msk.bf16.mxu1 %vm1538_vm1, %v2678_v3  ;;  %v2680_v5 = vld [vmem:[%s3164_s8 + $0xb0] ss:$12 sps:$4 sm:$0xff]   ;;  %v2683_v8 = vld [vmem:[%s3164_s8 + $0x158] ss:$12 sps:$4 sm:$0xff]  }
  0x26   : > { %1735 = vmatpush1.bf16.xpose.msra.mxu0 %v2679_v4  ;;  %v2681_v6 = vld [vmem:[%s3164_s8 + $0x94] ss:$12 sps:$4 sm:$0xff]   ;;  %v1564_v7 = vsel %vm1538_vm1, %v2680_v5, 0  ;;  %v2685_v9 = vld [vmem:[%s3164_s8 + $0x98] ss:$12 sps:$4 sm:$0xff]   ;;  %v275_v38 = vld [vmem:[%s3159_s27 + $0x8] sm:$0xff] }
  0x27   : > { %2496 = vmatpush3.bf16.xpose.msra.mxu1 %v1564_v7  ;;  %1736 = vmatprep.subr.bf16.mxu0 %v2681_v6  ;;  %v2684_v10 = vld [vmem:[%s3164_s8 + $0x90] ss:$12 sps:$4 sm:$0xff]   ;;  %v1561_v12 = vsel %vm1538_vm1, %v2685_v9, 0  ;;  %v2688_v13 = vld [vmem:[%s3164_s8 + $0x140] ss:$12 sps:$4 sm:$0xff]   ;;  %v3229_v40 = vpack.c.bf16 %v275_v38, %v275_v38  ;;  %p2488_p2 = scmp.ne.s32.totalorder %s3028_s18, 1 }
  0x28   : > { %2568 = vmatprep.subr.msk.bf16.mxu1 %vm1538_vm1, %v2683_v8  ;;  %v2686_v11 = vld [vmem:[%s3164_s8 + $0x7c] ss:$12 sps:$4 sm:$0xff]   ;;  %v2690_v14 = vld [vmem:[%s3164_s8 + $0x80] ss:$12 sps:$4 sm:$0xff]   ;;  %v2689_v15 = vld [vmem:[%s3164_s8 + $0x78] ss:$12 sps:$4 sm:$0xff]  }
  0x29   : > { %v2691_v16 = vld [vmem:[%s3164_s8 + $0x64] ss:$12 sps:$4 sm:$0xff]   ;;  %v2693_v17 = vld [vmem:[%s3164_s8 + $0x128] ss:$12 sps:$4 sm:$0xff]   ;;  %v1558_v18 = vsel %vm1538_vm1, %v2690_v14, 0  ;;  %1766 = vmatprep.mubr.bf16.mxu0 %v3229_v40 }
  0x2a   : > { %v2695_v19 = vld [vmem:[%s3164_s8 + $0x68] ss:$12 sps:$4 sm:$0xff]   ;;  %v2694_v20 = vld [vmem:[%s3164_s8 + $0x60] ss:$12 sps:$4 sm:$0xff]   ;;  %v2698_v25 = vld [vmem:[%s3164_s8 + $0x110] ss:$12 sps:$4 sm:$0xff]  }
  0x2b   : > { %v2696_v21 = vld [vmem:[%s3164_s8 + $0x4c] ss:$12 sps:$4 sm:$0xff]   ;;  %v276_v22 = vld [vmem:[%s3159_s27 + $0x10] sm:$0xff]  ;;  %v1555_v24 = vsel %vm1538_vm1, %v2695_v19, 0  ;;  %v2706_v33 = vld [vmem:[%s3164_s8 + $0x1c] ss:$12 sps:$4 sm:$0xff]  }
  0x2c   : > { %v3206_v23 = vpack.c.bf16 %v276_v22, %v276_v22  ;;  %v2700_v26 = vld [vmem:[%s3164_s8 + $0x50] ss:$12 sps:$4 sm:$0xff]   ;;  %v2699_v27 = vld [vmem:[%s3164_s8 + $0x48] ss:$12 sps:$4 sm:$0xff]   ;;  %v2703_v30 = vld [vmem:[%s3164_s8 + $0xf8] ss:$12 sps:$4 sm:$0xff]  }
  0x2d   : > { %v2701_v28 = vld [vmem:[%s3164_s8 + $0x34] ss:$12 sps:$4 sm:$0xff]   ;;  %v1552_v29 = vsel %vm1538_vm1, %v2700_v26, 0  ;;  %v2705_v31 = vld [vmem:[%s3164_s8 + $0x38] ss:$12 sps:$4 sm:$0xff]  }
  0x2e   : > { %1737 = vmatpush1.bf16.xpose.msra.mxu0 %v2684_v10  ;;  %2511 = vmatprep.mubr.msk.bf16.mxu1 %vm1538_vm1, %v3206_v23  ;;  %v2704_v32 = vld [vmem:[%s3164_s8 + $0x30] ss:$12 sps:$4 sm:$0xff]   ;;  %v1549_v34 = vsel %vm1538_vm1, %v2705_v31, 0  ;;  %v2708_v35 = vld [vmem:[%s3164_s8 + $0xe0] ss:$12 sps:$4 sm:$0xff]  }
  0x2f   : > { %1738 = vmatprep.subr.bf16.mxu0 %v2686_v11  ;;  %2498 = vmatpush3.bf16.xpose.msra.mxu1 %v1561_v12  ;;  %v2710_v36 = vld [vmem:[%s3164_s8 + $0x20] ss:$12 sps:$4 sm:$0xff]   ;;  %v2709_v37 = vld [vmem:[%s3164_s8 + $0x18] ss:$12 sps:$4 sm:$0xff]   ;;  %v2713_v42 = vld [vmem:[%s3164_s8 + $0xc8] ss:$12 sps:$4 sm:$0xff]  }
  0x30   : > { %2569 = vmatprep.subr.msk.bf16.mxu1 %vm1538_vm1, %v2688_v13  ;;  %v2711_v39 = vld [vmem:[%s3164_s8 + $0x4] ss:$12 sps:$4 sm:$0xff]   ;;  %v1546_v41 = vsel %vm1538_vm1, %v2710_v36, 0  ;;  %v2715_v43 = vld [vmem:[%s3164_s8 + $0x8] ss:$12 sps:$4 sm:$0xff]  }
  0x31   : > { %v2714_v44 = vld [vmem:[%s3164_s8] ss:$12 sps:$4 sm:$0xff]   ;;  %v1543_v46 = vsel %vm1538_vm1, %v2715_v43, 0  ;;  %v2721_v48 = vld [vmem:[%s3164_s8 + $0x168] ss:$12 sps:$4 sm:$0xff]  }
  0x32   : > { %v2716_v45 = vld [vmem:[%s3164_s8 + $0x16c] ss:$12 sps:$4 sm:$0xff]   ;;  %v2722_v49 = vld [vmem:[%s3164_s8 + $0x154] ss:$12 sps:$4 sm:$0xff]   ;;  %v2727_v52 = vld [vmem:[%s3164_s8 + $0x150] ss:$12 sps:$4 sm:$0xff]  }
  0x33   : > { %v2720_v47 = vld [vmem:[%s3164_s8 + $0x22c] ss:$12 sps:$4 sm:$0xff]   ;;  %v2718_v50 = vld [vmem:[%s3164_s8 + $0x228] ss:$12 sps:$4 sm:$0xff]   ;;  %v2724_v54 = vld [vmem:[%s3164_s8 + $0x210] ss:$12 sps:$4 sm:$0xff]  }
  0x34   : > { %v2726_v51 = vld [vmem:[%s3164_s8 + $0x214] ss:$12 sps:$4 sm:$0xff]   ;;  %v2728_v53 = vld [vmem:[%s3164_s8 + $0x13c] ss:$12 sps:$4 sm:$0xff]   ;;  %v2733_v56 = vld [vmem:[%s3164_s8 + $0x138] ss:$12 sps:$4 sm:$0xff]  }
  0x35   : > { %v2732_v55 = vld [vmem:[%s3164_s8 + $0x1fc] ss:$12 sps:$4 sm:$0xff]   ;;  %v2734_v57 = vld [vmem:[%s3164_s8 + $0x124] ss:$12 sps:$4 sm:$0xff]   ;;  %v2739_v60 = vld [vmem:[%s3164_s8 + $0x120] ss:$12 sps:$4 sm:$0xff]  }
  0x36   : > { %1739 = vmatpush1.bf16.xpose.msra.mxu0 %v2689_v15  ;;  %v2730_v58 = vld [vmem:[%s3164_s8 + $0x1f8] ss:$12 sps:$4 sm:$0xff]   ;;  %v2736_v61 = vld [vmem:[%s3164_s8 + $0x1e0] ss:$12 sps:$4 sm:$0xff]   ;;  %v2745_v0 = vld [vmem:[%s3164_s8 + $0x108] ss:$12 sps:$4 sm:$0xff]  }
  0x37   : > { %1740 = vmatprep.subr.bf16.mxu0 %v2691_v16  ;;  %2500 = vmatpush3.bf16.xpose.msra.mxu1 %v1558_v18  ;;  %v2738_v59 = vld [vmem:[%s3164_s8 + $0x1e4] ss:$12 sps:$4 sm:$0xff]   ;;  %v2740_v62 = vld [vmem:[%s3164_s8 + $0x10c] ss:$12 sps:$4 sm:$0xff]   ;;  %v2746_v1 = vld [vmem:[%s3164_s8 + $0xf4] ss:$12 sps:$4 sm:$0xff]  }
  0x38   : > { %2570 = vmatprep.subr.msk.bf16.mxu1 %vm1538_vm1, %v2693_v17  ;;  %v2744_v63 = vld [vmem:[%s3164_s8 + $0x1cc] ss:$12 sps:$4 sm:$0xff]   ;;  %v2742_v2 = vld [vmem:[%s3164_s8 + $0x1c8] ss:$12 sps:$4 sm:$0xff]   ;;  %v2751_v4 = vld [vmem:[%s3164_s8 + $0xf0] ss:$12 sps:$4 sm:$0xff]  }
  0x39   : > { %v2750_v3 = vld [vmem:[%s3164_s8 + $0x1b4] ss:$12 sps:$4 sm:$0xff]   ;;  %v2752_v5 = vld [vmem:[%s3164_s8 + $0xdc] ss:$12 sps:$4 sm:$0xff]   ;;  %v2757_v8 = vld [vmem:[%s3164_s8 + $0xd8] ss:$12 sps:$4 sm:$0xff]  }
  0x3a   : > { %v2748_v6 = vld [vmem:[%s3164_s8 + $0x1b0] ss:$12 sps:$4 sm:$0xff]   ;;  %v2754_v10 = vld [vmem:[%s3164_s8 + $0x198] ss:$12 sps:$4 sm:$0xff]   ;;  %v2763_v12 = vld [vmem:[%s3164_s8 + $0xc0] ss:$12 sps:$4 sm:$0xff]  }
  0x3b   : > { %v2756_v7 = vld [vmem:[%s3164_s8 + $0x19c] ss:$12 sps:$4 sm:$0xff]   ;;  %v2758_v9 = vld [vmem:[%s3164_s8 + $0xc4] ss:$12 sps:$4 sm:$0xff]   ;;  %v2760_v14 = vld [vmem:[%s3164_s8 + $0x180] ss:$12 sps:$4 sm:$0xff]  }
  0x3c   : > { %v2762_v11 = vld [vmem:[%s3164_s8 + $0x184] ss:$12 sps:$4 sm:$0xff]   ;;  %v2766_v15 = vld [vmem:[%s3164_s8 + $0x2ec] ss:$12 sps:$4 sm:$0xff]   ;;  %v2771_v22 = vld [vmem:[%s3164_s8 + $0x2d4] ss:$12 sps:$4 sm:$0xff]  }
  0x3d   : > { %v2767_v13 = vld [vmem:[%s3164_s8 + $0x2f0] ss:$12 sps:$4 sm:$0xff]   ;;  %v274_v16 = vld [vmem:[%s3159_s27] sm:$0xff]  ;;  %v2782_v31 = vld [vmem:[%s3164_s8 + $0x2a8] ss:$12 sps:$4 sm:$0xff]  }
  0x3e   : > { %1741 = vmatpush1.bf16.xpose.msra.mxu0 %v2694_v20  ;;  %v2768_v17 = vld [vmem:[%s3164_s8 + $0x230] ss:$12 sps:$4 sm:$0xff]   ;;  %v3278_v18 = vpack.c.bf16 %v274_v16, %v274_v16  ;;  %v2772_v20 = vld [vmem:[%s3164_s8 + $0x2d8] ss:$12 sps:$4 sm:$0xff]   ;;  %v2777_v26 = vld [vmem:[%s3164_s8 + $0x2c0] ss:$12 sps:$4 sm:$0xff]  }
  0x3f   : > { %1742 = vmatprep.subr.bf16.mxu0 %v2696_v21  ;;  %2502 = vmatpush3.bf16.xpose.msra.mxu1 %v1555_v24  ;;  %v1612_v19 = vsel %vm1538_vm1, %v2768_v17, 0  ;;  %v2764_v21 = vld [vmem:[%s3164_s8 + $0x2e8] ss:$12 sps:$4 sm:$0xff]   ;;  %v2773_v24 = vld [vmem:[%s3164_s8 + $0x218] ss:$12 sps:$4 sm:$0xff]  }
  0x40   : > { %2571 = vmatprep.subr.msk.bf16.mxu1 %vm1538_vm1, %v2698_v25  ;;  %v1609_v25 = vsel %vm1538_vm1, %v2773_v24, 0  ;;  %v2787_v36 = vld [vmem:[%s3164_s8 + $0x290] ss:$12 sps:$4 sm:$0xff]   ;;  %v2786_v38 = vld [vmem:[%s3164_s8 + $0x28c] ss:$12 sps:$4 sm:$0xff]  }
  0x41   : > { %v2784_v43 = vld [vmem:[%s3164_s8 + $0x288] ss:$12 sps:$4 sm:$0xff]   ;;  %v2828_v16 = vld [vmem:[%s3164_s8 + $0x350] ss:$12 sps:$4 sm:$0xff]  }
  0x42   : > { %v2824_v17 = vld [vmem:[%s3164_s8 + $0x348] ss:$12 sps:$4 sm:$0xff]   ;;  %v2829_v24 = vld [vmem:[%s3164_s8 + $0x330] ss:$12 sps:$4 sm:$0xff]  }
  0x46   : > { %1743 = vmatpush1.bf16.xpose.msra.mxu0 %v2699_v27  ;;  %v2769_v27 = vld [vmem:[%s3164_s8 + $0x2d0] ss:$12 sps:$4 sm:$0xff]  }
  0x47   : > { %1744 = vmatprep.subr.bf16.mxu0 %v2701_v28  ;;  %2504 = vmatpush3.bf16.xpose.msra.mxu1 %v1552_v29  ;;  %v2776_v28 = vld [vmem:[%s3164_s8 + $0x2bc] ss:$12 sps:$4 sm:$0xff]   ;;  %v2778_v29 = vld [vmem:[%s3164_s8 + $0x200] ss:$12 sps:$4 sm:$0xff]  }
  0x48   : > { %2572 = vmatprep.subr.msk.bf16.mxu1 %vm1538_vm1, %v2703_v30  ;;  %v1606_v30 = vsel %vm1538_vm1, %v2778_v29, 0  ;;  %v2834_v29 = vld [vmem:[%s3164_s8 + $0x318] ss:$12 sps:$4 sm:$0xff]  }
  0x4e   : > { %1745 = vmatpush1.bf16.xpose.msra.mxu0 %v2704_v32  ;;  %v2774_v32 = vld [vmem:[%s3164_s8 + $0x2b8] ss:$12 sps:$4 sm:$0xff]  }
  0x4f   : > { %1746 = vmatprep.subr.bf16.mxu0 %v2706_v33  ;;  %2506 = vmatpush3.bf16.xpose.msra.mxu1 %v1549_v34  ;;  %v2781_v33 = vld [vmem:[%s3164_s8 + $0x2a4] ss:$12 sps:$4 sm:$0xff]   ;;  %v2783_v34 = vld [vmem:[%s3164_s8 + $0x1e8] ss:$12 sps:$4 sm:$0xff]  }
  0x50   : > { %2573 = vmatprep.subr.msk.bf16.mxu1 %vm1538_vm1, %v2708_v35  ;;  %v1603_v35 = vsel %vm1538_vm1, %v2783_v34, 0  ;;  %v2839_v34 = vld [vmem:[%s3164_s8 + $0x300] ss:$12 sps:$4 sm:$0xff]  }
  0x56   : > { %1747 = vmatpush1.bf16.xpose.msra.mxu0 %v2709_v37  ;;  %v2779_v37 = vld [vmem:[%s3164_s8 + $0x2a0] ss:$12 sps:$4 sm:$0xff]  }
  0x57   : > { %1748 = vmatprep.subr.bf16.mxu0 %v2711_v39  ;;  %2508 = vmatpush3.bf16.xpose.msra.mxu1 %v1546_v41  ;;  %v2788_v39 = vld [vmem:[%s3164_s8 + $0x1d0] ss:$12 sps:$4 sm:$0xff]  }
  0x58   : > { %2574 = vmatprep.subr.msk.bf16.mxu1 %vm1538_vm1, %v2713_v42  ;;  %v1600_v41 = vsel %vm1538_vm1, %v2788_v39, 0  ;;  %v2792_v42 = vld [vmem:[%s3164_s8 + $0x278] ss:$12 sps:$4 sm:$0xff]   ;;  %v2852_v39 = vld [vmem:[%s3164_s8 + $0x454] ss:$12 sps:$4 sm:$0xff]  }
  0x5e   : > { %1749 = vmatpush1.bf16.xpose.msra.mxu0 %v2714_v44  ;;  %v2791_v44 = vld [vmem:[%s3164_s8 + $0x274] ss:$12 sps:$4 sm:$0xff]  }
  0x5f   : > { %1750 = vmatprep.subr.bf16.mxu0 %v2716_v45  ;;  %2510 = vmatpush3.bf16.xpose.msra.mxu1 %v1543_v46  ;;  %v2793_v45 = vld [vmem:[%s3164_s8 + $0x1b8] ss:$12 sps:$4 sm:$0xff]  }
  0x60   : > { %1816 = vmatprep.subr.bf16.mxu1 %v2720_v47  ;;  %v1597_v46 = vsel %vm1538_vm1, %v2793_v45, 0  ;;  %v2797_v47 = vld [vmem:[%s3164_s8 + $0x260] ss:$12 sps:$4 sm:$0xff]   ;;  %v2850_v45 = vld [vmem:[%s3164_s8 + $0x450] ss:$12 sps:$4 sm:$0xff]  }
  0x66   : > { %1751 = vmatpush2.bf16.xpose.msra.mxu0 %v2721_v48  ;;  %2512 = vmatmul.mubr.msk.bf16.vlgmr.msra.gmra.mxu1 %vm1538_vm1, %v3206_v23  ;;  %v2789_v48 = vld [vmem:[%s3164_s8 + $0x270] ss:$12 sps:$4 sm:$0xff]  }
  0x67   : > { %1752 = vmatprep.subr.bf16.mxu0 %v2722_v49  ;;  %1817 = vmatpush1.bf16.xpose.msra.mxu1 %v2718_v50  ;;  %v2796_v49 = vld [vmem:[%s3164_s8 + $0x25c] ss:$12 sps:$4 sm:$0xff]   ;;  %v2798_v50 = vld [vmem:[%s3164_s8 + $0x1a0] ss:$12 sps:$4 sm:$0xff]  }
  0x68   : > { %1848 = vmatprep.mubr.bf16.mxu1 %v3229_v40  ;;  %1818 = vmatprep.subr.bf16.mxu1 %v2726_v51  ;;  %v1594_v51 = vsel %vm1538_vm1, %v2798_v50, 0  ;;  %v2861_v50 = vld [vmem:[%s3164_s8 + $0x4fc] ss:$12 sps:$4 sm:$0xff]  }
  0x6e   : > { %1753 = vmatpush2.bf16.xpose.msra.mxu0 %v2727_v52  ;;  %v2802_v52 = vld [vmem:[%s3164_s8 + $0x248] ss:$12 sps:$4 sm:$0xff]  }
  0x6f   : > { %1754 = vmatprep.subr.bf16.mxu0 %v2728_v53  ;;  %1819 = vmatpush1.bf16.xpose.msra.mxu1 %v2724_v54  ;;  %v2794_v53 = vld [vmem:[%s3164_s8 + $0x258] ss:$12 sps:$4 sm:$0xff]  }
  0x70   : > { %1820 = vmatprep.subr.bf16.mxu1 %v2732_v55  ;;  %v2801_v54 = vld [vmem:[%s3164_s8 + $0x244] ss:$12 sps:$4 sm:$0xff]   ;;  %v2803_v55 = vld [vmem:[%s3164_s8 + $0x188] ss:$12 sps:$4 sm:$0xff]  }
  0x76   : > { %1755 = vmatpush2.bf16.xpose.msra.mxu0 %v2733_v56  ;;  %v1591_v56 = vsel %vm1538_vm1, %v2803_v55, 0  ;;  %v2870_v55 = vld [vmem:[%s3164_s8 + $0x40c] ss:$12 sps:$4 sm:$0xff]  }
  0x77   : > { %1756 = vmatprep.subr.bf16.mxu0 %v2734_v57  ;;  %1821 = vmatpush1.bf16.xpose.msra.mxu1 %v2730_v58  ;;  %v2806_v57 = vld [vmem:[%s3164_s8 + $0x3ac] ss:$12 sps:$4 sm:$0xff]  }
  0x78   : > { %1822 = vmatprep.subr.bf16.mxu1 %v2738_v59  ;;  %v2799_v58 = vld [vmem:[%s3164_s8 + $0x240] ss:$12 sps:$4 sm:$0xff]   ;;  %v2807_v59 = vld [vmem:[%s3164_s8 + $0x470] ss:$12 sps:$4 sm:$0xff]  }
  0x7e   : > { %1757 = vmatpush2.bf16.xpose.msra.mxu0 %v2739_v60  ;;  %v2808_v60 = vld [vmem:[%s3164_s8 + $0x3b0] ss:$12 sps:$4 sm:$0xff]  }
  0x7f   : > { %1758 = vmatprep.subr.bf16.mxu0 %v2740_v62  ;;  %1823 = vmatpush1.bf16.xpose.msra.mxu1 %v2736_v61  ;;  %v2804_v61 = vld [vmem:[%s3164_s8 + $0x3a8] ss:$12 sps:$4 sm:$0xff]  }
  0x80   : > { %1824 = vmatprep.subr.bf16.mxu1 %v2744_v63  ;;  %v2811_v62 = vld [vmem:[%s3164_s8 + $0x394] ss:$12 sps:$4 sm:$0xff]   ;;  %v1660_v63 = vsel %vm1538_vm1, %v2808_v60, 0 }
  0x81   : > { %v2871_v60 = vld [vmem:[%s3164_s8 + $0x4c8] ss:$12 sps:$4 sm:$0xff]  }
  0x86   : > { %1759 = vmatpush2.bf16.xpose.msra.mxu0 %v2745_v0  ;;  %v2812_v0 = vld [vmem:[%s3164_s8 + $0x458] ss:$12 sps:$4 sm:$0xff]  }
  0x87   : > { %1760 = vmatprep.subr.bf16.mxu0 %v2746_v1  ;;  %1825 = vmatpush1.bf16.xpose.msra.mxu1 %v2742_v2  ;;  %v2813_v1 = vld [vmem:[%s3164_s8 + $0x398] ss:$12 sps:$4 sm:$0xff]   ;;  %v2809_v2 = vld [vmem:[%s3164_s8 + $0x390] ss:$12 sps:$4 sm:$0xff]  }
  0x88   : > { %1826 = vmatprep.subr.bf16.mxu1 %v2750_v3  ;;  %v2816_v3 = vld [vmem:[%s3164_s8 + $0x37c] ss:$12 sps:$4 sm:$0xff]  }
  0x8e   : > { %1761 = vmatpush2.bf16.xpose.msra.mxu0 %v2751_v4  ;;  %v1657_v4 = vsel %vm1538_vm1, %v2813_v1, 0  ;;  %v2885_v1 = vld [vmem:[%s3164_s8 + $0x49c] ss:$12 sps:$4 sm:$0xff]  }
  0x8f   : > { %1762 = vmatprep.subr.bf16.mxu0 %v2752_v5  ;;  %1827 = vmatpush1.bf16.xpose.msra.mxu1 %v2748_v6  ;;  %v2817_v5 = vld [vmem:[%s3164_s8 + $0x440] ss:$12 sps:$4 sm:$0xff]  }
  0x90   : > { %1828 = vmatprep.subr.bf16.mxu1 %v2756_v7  ;;  %v2818_v6 = vld [vmem:[%s3164_s8 + $0x380] ss:$12 sps:$4 sm:$0xff]   ;;  %v2814_v7 = vld [vmem:[%s3164_s8 + $0x378] ss:$12 sps:$4 sm:$0xff]  }
  0x96   : > { %1763 = vmatpush2.bf16.xpose.msra.mxu0 %v2757_v8  ;;  %v2821_v8 = vld [vmem:[%s3164_s8 + $0x364] ss:$12 sps:$4 sm:$0xff]  }
  0x97   : > { %1764 = vmatprep.subr.bf16.mxu0 %v2758_v9  ;;  %1829 = vmatpush1.bf16.xpose.msra.mxu1 %v2754_v10  ;;  %v1654_v9 = vsel %vm1538_vm1, %v2818_v6, 0  ;;  %v2822_v10 = vld [vmem:[%s3164_s8 + $0x428] ss:$12 sps:$4 sm:$0xff]   ;;  %v538_v6 = vlaneseq }
  0x98   : > { %1830 = vmatprep.subr.bf16.mxu1 %v2762_v11  ;;  %v2823_v11 = vld [vmem:[%s3164_s8 + $0x368] ss:$12 sps:$4 sm:$0xff]  }
  0x9e   : > { %1765 = vmatpush2.bf16.xpose.msra.mxu0 %v2763_v12  ;;  %v2819_v12 = vld [vmem:[%s3164_s8 + $0x360] ss:$12 sps:$4 sm:$0xff]  }
  0x9f   : > { %2575 = vmatprep.subr.msk.bf16.mxu0 %vm1538_vm1, %v2767_v13  ;;  %1831 = vmatpush1.bf16.xpose.msra.mxu1 %v2760_v14  ;;  %v2826_v13 = vld [vmem:[%s3164_s8 + $0x34c] ss:$12 sps:$4 sm:$0xff]   ;;  %v1651_v14 = vsel %vm1538_vm1, %v2823_v11, 0 }
  0xa0   : > { %1832 = vmatprep.subr.bf16.mxu1 %v2766_v15  ;;  %v2827_v15 = vld [vmem:[%s3164_s8 + $0x410] ss:$12 sps:$4 sm:$0xff]   ;;  %v2894_v11 = vld [vmem:[%s3164_s8 + $0x5ec] ss:$12 sps:$4 sm:$0xff]  }
  0xa5   : > { %1767 = vmatmul.mubr.bf16.vlgmr.msra.gmra.mxu0 %v3278_v18 }
  0xa6   : > { %2514 = vmatpush3.bf16.xpose.msra.mxu0 %v1612_v19  ;;  %2529 = vmatprep.mubr.msk.bf16.mxu0 %vm1538_vm1, %v3206_v23  ;;  %v2831_v19 = vld [vmem:[%s3164_s8 + $0x334] ss:$12 sps:$4 sm:$0xff]  }
  0xa7   : > { %2576 = vmatprep.subr.msk.bf16.mxu0 %vm1538_vm1, %v2772_v20  ;;  %1833 = vmatpush2.bf16.xpose.msra.mxu1 %v2764_v21  ;;  %v1648_v20 = vsel %vm1538_vm1, %v2828_v16, 0  ;;  %v2832_v21 = vld [vmem:[%s3164_s8 + $0x3f8] ss:$12 sps:$4 sm:$0xff]  }
  0xa8   : > { %1834 = vmatprep.subr.bf16.mxu1 %v2771_v22  ;;  %v2833_v22 = vld [vmem:[%s3164_s8 + $0x338] ss:$12 sps:$4 sm:$0xff]  }
  0xae   : > { %2516 = vmatpush3.bf16.xpose.msra.mxu0 %v1609_v25  ;;  %v2836_v25 = vld [vmem:[%s3164_s8 + $0x31c] ss:$12 sps:$4 sm:$0xff]  }
  0xaf   : > { %2577 = vmatprep.subr.msk.bf16.mxu0 %vm1538_vm1, %v2777_v26  ;;  %1835 = vmatpush2.bf16.xpose.msra.mxu1 %v2769_v27  ;;  %v1645_v26 = vsel %vm1538_vm1, %v2833_v22, 0  ;;  %v2837_v27 = vld [vmem:[%s3164_s8 + $0x3e0] ss:$12 sps:$4 sm:$0xff]  }
  0xb0   : > { %1836 = vmatprep.subr.bf16.mxu1 %v2776_v28  ;;  %v2838_v28 = vld [vmem:[%s3164_s8 + $0x320] ss:$12 sps:$4 sm:$0xff]  }
  0xb6   : > { %2518 = vmatpush3.bf16.xpose.msra.mxu0 %v1606_v30  ;;  %v2841_v30 = vld [vmem:[%s3164_s8 + $0x304] ss:$12 sps:$4 sm:$0xff]  }
  0xb7   : > { %2578 = vmatprep.subr.msk.bf16.mxu0 %vm1538_vm1, %v2782_v31  ;;  %1837 = vmatpush2.bf16.xpose.msra.mxu1 %v2774_v32  ;;  %v1642_v31 = vsel %vm1538_vm1, %v2838_v28, 0  ;;  %v2842_v32 = vld [vmem:[%s3164_s8 + $0x3c8] ss:$12 sps:$4 sm:$0xff]  }
  0xb8   : > { %1838 = vmatprep.subr.bf16.mxu1 %v2781_v33  ;;  %v2843_v33 = vld [vmem:[%s3164_s8 + $0x308] ss:$12 sps:$4 sm:$0xff]  }
  0xbe   : > { %2520 = vmatpush3.bf16.xpose.msra.mxu0 %v1603_v35  ;;  %v2846_v35 = vld [vmem:[%s3164_s8 + $0x46c] ss:$12 sps:$4 sm:$0xff]  }
  0xbf   : > { %2579 = vmatprep.subr.msk.bf16.mxu0 %vm1538_vm1, %v2787_v36  ;;  %1839 = vmatpush2.bf16.xpose.msra.mxu1 %v2779_v37  ;;  %v1639_v36 = vsel %vm1538_vm1, %v2843_v33, 0  ;;  %v2849_v37 = vld [vmem:[%s3164_s8 + $0x52c] ss:$12 sps:$4 sm:$0xff]  }
  0xc0   : > { %1840 = vmatprep.subr.bf16.mxu1 %v2786_v38  ;;  %v2844_v38 = vld [vmem:[%s3164_s8 + $0x468] ss:$12 sps:$4 sm:$0xff]  }
  0xc6   : > { %2522 = vmatpush3.bf16.xpose.msra.mxu0 %v1600_v41  ;;  %v2847_v41 = vld [vmem:[%s3164_s8 + $0x528] ss:$12 sps:$4 sm:$0xff]  }
  0xc7   : > { %2580 = vmatprep.subr.msk.bf16.mxu0 %vm1538_vm1, %v2792_v42  ;;  %1841 = vmatpush2.bf16.xpose.msra.mxu1 %v2784_v43  ;;  %v2855_v42 = vld [vmem:[%s3164_s8 + $0x514] ss:$12 sps:$4 sm:$0xff]  }
  0xc8   : > { %1842 = vmatprep.subr.bf16.mxu1 %v2791_v44 }
  0xce   : > { %2524 = vmatpush3.bf16.xpose.msra.mxu0 %v1597_v46 }
  0xcf   : > { %2581 = vmatprep.subr.msk.bf16.mxu0 %vm1538_vm1, %v2797_v47  ;;  %1843 = vmatpush2.bf16.xpose.msra.mxu1 %v2789_v48  ;;  %v2858_v47 = vld [vmem:[%s3164_s8 + $0x43c] ss:$12 sps:$4 sm:$0xff]  }
  0xd0   : > { %1844 = vmatprep.subr.bf16.mxu1 %v2796_v49  ;;  %v2853_v48 = vld [vmem:[%s3164_s8 + $0x510] ss:$12 sps:$4 sm:$0xff]  }
  0xd6   : > { %2526 = vmatpush3.bf16.xpose.msra.mxu0 %v1594_v51  ;;  %v2856_v51 = vld [vmem:[%s3164_s8 + $0x438] ss:$12 sps:$4 sm:$0xff]  }
  0xd7   : > { %2582 = vmatprep.subr.msk.bf16.mxu0 %vm1538_vm1, %v2802_v52  ;;  %1845 = vmatpush2.bf16.xpose.msra.mxu1 %v2794_v53  ;;  %v2859_v52 = vld [vmem:[%s3164_s8 + $0x4f8] ss:$12 sps:$4 sm:$0xff]  }
  0xd8   : > { %1846 = vmatprep.subr.bf16.mxu1 %v2801_v54  ;;  %v2867_v53 = vld [vmem:[%s3164_s8 + $0x4e4] ss:$12 sps:$4 sm:$0xff]   ;;  %v2862_v54 = vld [vmem:[%s3164_s8 + $0x420] ss:$12 sps:$4 sm:$0xff]  }
  0xde   : > { %2528 = vmatpush3.bf16.xpose.msra.mxu0 %v1591_v56  ;;  %v2865_v56 = vld [vmem:[%s3164_s8 + $0x4e0] ss:$12 sps:$4 sm:$0xff]  }
  0xdf   : > { %1898 = vmatprep.subr.bf16.mxu0 %v2806_v57  ;;  %1847 = vmatpush2.bf16.xpose.msra.mxu1 %v2799_v58  ;;  %v2873_v57 = vld [vmem:[%s3164_s8 + $0x4cc] ss:$12 sps:$4 sm:$0xff]   ;;  %v2868_v58 = vld [vmem:[%s3164_s8 + $0x408] ss:$12 sps:$4 sm:$0xff]  }
  0xe0   : > { %2583 = vmatprep.subr.msk.bf16.mxu1 %vm1538_vm1, %v2807_v59  ;;  %v2876_v59 = vld [vmem:[%s3164_s8 + $0x3f4] ss:$12 sps:$4 sm:$0xff]  }
  0xe5   : > { %2530 = vmatmul.mubr.msk.bf16.vlgmr.msra.gmra.mxu0 %vm1538_vm1, %v3206_v23 }
  0xe6   : > { %1899 = vmatpush1.bf16.xpose.msra.mxu0 %v2804_v61  ;;  %1930 = vmatprep.mubr.bf16.mxu0 %v3229_v40  ;;  %v2879_v61 = vld [vmem:[%s3164_s8 + $0x4b4] ss:$12 sps:$4 sm:$0xff]  }
  0xe7   : > { %1849 = vmatmul.mubr.bf16.vlgmr.msra.gmra.mxu1 %v3278_v18  ;;  %1900 = vmatprep.subr.bf16.mxu0 %v2811_v62  ;;  %v2874_v62 = vld [vmem:[%s3164_s8 + $0x3f0] ss:$12 sps:$4 sm:$0xff]  }
  0xe8   : > { %2532 = vmatpush3.bf16.xpose.msra.mxu1 %v1660_v63  ;;  %2547 = vmatprep.mubr.msk.bf16.mxu1 %vm1538_vm1, %v3206_v23  ;;  %v2882_v63 = vld [vmem:[%s3164_s8 + $0x3dc] ss:$12 sps:$4 sm:$0xff]  }
  0xe9   : > { %2584 = vmatprep.subr.msk.bf16.mxu1 %vm1538_vm1, %v2812_v0  ;;  %v2877_v0 = vld [vmem:[%s3164_s8 + $0x4b0] ss:$12 sps:$4 sm:$0xff]  }
  0xee   : > { %1901 = vmatpush1.bf16.xpose.msra.mxu0 %v2809_v2  ;;  %v2880_v2 = vld [vmem:[%s3164_s8 + $0x3d8] ss:$12 sps:$4 sm:$0xff]  }
  0xef   : > { %1902 = vmatprep.subr.bf16.mxu0 %v2816_v3  ;;  %v2888_v3 = vld [vmem:[%s3164_s8 + $0x3c4] ss:$12 sps:$4 sm:$0xff]  }
  0xf0   : > { %2534 = vmatpush3.bf16.xpose.msra.mxu1 %v1657_v4  ;;  %v2883_v4 = vld [vmem:[%s3164_s8 + $0x498] ss:$12 sps:$4 sm:$0xff]  }
  0xf1   : > { %2585 = vmatprep.subr.msk.bf16.mxu1 %vm1538_vm1, %v2817_v5  ;;  %v2891_v5 = vld [vmem:[%s3164_s8 + $0x484] ss:$12 sps:$4 sm:$0xff]  }
  0xf6   : > { %1903 = vmatpush1.bf16.xpose.msra.mxu0 %v2814_v7  ;;  %v2886_v7 = vld [vmem:[%s3164_s8 + $0x3c0] ss:$12 sps:$4 sm:$0xff]  }
  0xf7   : > { %1904 = vmatprep.subr.bf16.mxu0 %v2821_v8  ;;  %v3419_v8 = vshrl.u32 %v538_v6, 7 }
  0xf8   : > { %2536 = vmatpush3.bf16.xpose.msra.mxu1 %v1654_v9  ;;  %v2895_v9 = vld [vmem:[%s3164_s8 + $0x5f0] ss:$12 sps:$4 sm:$0xff]  }
  0xf9   : > { %2586 = vmatprep.subr.msk.bf16.mxu1 %vm1538_vm1, %v2822_v10  ;;  %v2889_v10 = vld [vmem:[%s3164_s8 + $0x480] ss:$12 sps:$4 sm:$0xff]  }
  0xfe   : > { %1905 = vmatpush1.bf16.xpose.msra.mxu0 %v2819_v12  ;;  %v540_v12 = vsub.s32 0, %v3419_v8 }
  0xff   : > { %1906 = vmatprep.subr.bf16.mxu0 %v2826_v13  ;;  %v3430_v13 = vld [vmem:[%s259_s23] sm:$0xff] }
 0x100   : > { %2538 = vmatpush3.bf16.xpose.msra.mxu1 %v1651_v14  ;;  %v2896_v14 = vld [vmem:[%s3164_s8 + $0x530] ss:$12 sps:$4 sm:$0xff]   ;;  %v541_v16 = vrot.slane %v3430_v13, %v540_v12 }
 0x101   : > { %2587 = vmatprep.subr.msk.bf16.mxu1 %vm1538_vm1, %v2827_v15  ;;  %v544_v15 = vsub.s32 1, %v3419_v8 }
 0x106   : > { %1907 = vmatpush1.bf16.xpose.msra.mxu0 %v2824_v17  ;;  %v1708_v17 = vsel %vm1538_vm1, %v2896_v14, 0 }
 0x107   : > { %1908 = vmatprep.subr.bf16.mxu0 %v2831_v19  ;;  %v2900_v19 = vld [vmem:[%s3164_s8 + $0x5d8] ss:$12 sps:$4 sm:$0xff]  }
 0x108   : > { %2540 = vmatpush3.bf16.xpose.msra.mxu1 %v1648_v20  ;;  %v2892_v20 = vld [vmem:[%s3164_s8 + $0x5e8] ss:$12 sps:$4 sm:$0xff]  }
 0x109   : > { %2588 = vmatprep.subr.msk.bf16.mxu1 %vm1538_vm1, %v2832_v21  ;;  %v545_v21 = vrot.slane %v3430_v13, %v544_v15 }
 0x10e   : > { %1909 = vmatpush1.bf16.xpose.msra.mxu0 %v2829_v24  ;;  %v2899_v24 = vld [vmem:[%s3164_s8 + $0x5d4] ss:$12 sps:$4 sm:$0xff]  }
 0x10f   : > { %1910 = vmatprep.subr.bf16.mxu0 %v2836_v25 }
 0x110   : > { %2542 = vmatpush3.bf16.xpose.msra.mxu1 %v1645_v26 }
 0x111   : > { %2589 = vmatprep.subr.msk.bf16.mxu1 %vm1538_vm1, %v2837_v27  ;;  %v2901_v27 = vld [vmem:[%s3164_s8 + $0x518] ss:$12 sps:$4 sm:$0xff]  }
 0x112   : > { %v1705_v33 = vsel %vm1538_vm1, %v2901_v27, 0 }
 0x116   : > { %1911 = vmatpush1.bf16.xpose.msra.mxu0 %v2834_v29 }
 0x117   : > { %1912 = vmatprep.subr.bf16.mxu0 %v2841_v30 }
 0x118   : > { %2544 = vmatpush3.bf16.xpose.msra.mxu1 %v1642_v31 }
 0x119   : > { %2590 = vmatprep.subr.msk.bf16.mxu1 %vm1538_vm1, %v2842_v32 }
 0x11e   : > { %1913 = vmatpush1.bf16.xpose.msra.mxu0 %v2839_v34  ;;  %v2905_v34 = vld [vmem:[%s3164_s8 + $0x5c0] ss:$12 sps:$4 sm:$0xff]  }
 0x11f   : > { %1914 = vmatprep.subr.bf16.mxu0 %v2846_v35  ;;  %v2897_v35 = vld [vmem:[%s3164_s8 + $0x5d0] ss:$12 sps:$4 sm:$0xff]  }
 0x120   : > { %2546 = vmatpush3.bf16.xpose.msra.mxu1 %v1639_v36  ;;  %v2904_v36 = vld [vmem:[%s3164_s8 + $0x5bc] ss:$12 sps:$4 sm:$0xff]  }
 0x121   : > { %1980 = vmatprep.subr.bf16.mxu1 %v2849_v37  ;;  %v2906_v37 = vld [vmem:[%s3164_s8 + $0x500] ss:$12 sps:$4 sm:$0xff]  }
 0x126   : > { %1915 = vmatpush2.bf16.xpose.msra.mxu0 %v2844_v38  ;;  %v3387_v43 = vpop.f32.mrf.mxu1  ;;  %v1702_v38 = vsel %vm1538_vm1, %v2906_v37, 0  ;;  %v564_v37 = vsub.s32 6, %v3419_v8 }
 0x127   : > { %2548 = vmatmul.mubr.msk.bf16.vlgmr.msra.gmra.mxu1 %vm1538_vm1, %v3206_v23  ;;  %1916 = vmatprep.subr.bf16.mxu0 %v2852_v39  ;;  %v2910_v39 = vld [vmem:[%s3164_s8 + $0x5a8] ss:$12 sps:$4 sm:$0xff]  }
 0x128   : > { %1981 = vmatpush1.bf16.xpose.msra.mxu1 %v2847_v41  ;;  %2012 = vmatprep.mubr.bf16.mxu1 %v3229_v40  ;;  %v3392_v44 = vpop.f32.mrf.mxu1  ;;  %v2864_v40 = vld [vmem:[%s3164_s8 + $0x424] ss:$12 sps:$4 sm:$0xff]  }
 0x129   : > { %1982 = vmatprep.subr.bf16.mxu1 %v2855_v42  ;;  %v2902_v41 = vld [vmem:[%s3164_s8 + $0x5b8] ss:$12 sps:$4 sm:$0xff]  }
 0x12a   : > { %v1813_v46 = vpop.f32.mrf.mxu1  ;;  %v2909_v42 = vld [vmem:[%s3164_s8 + $0x5a4] ss:$12 sps:$4 sm:$0xff]  }
 0x12b   : > { %v2907_v46 = vld [vmem:[%s3164_s8 + $0x5a0] ss:$12 sps:$4 sm:$0xff]  }
 0x12c   : > { %v1814_v49 = vpop.f32.mrf.mxu1 }
 0x12e   : > { %1917 = vmatpush2.bf16.xpose.msra.mxu0 %v2850_v45  ;;  %v2915_v45 = vld [vmem:[%s3164_s8 + $0x590] ss:$12 sps:$4 sm:$0xff]  }
 0x12f   : > { %1918 = vmatprep.subr.bf16.mxu0 %v2858_v47  ;;  %v2914_v47 = vld [vmem:[%s3164_s8 + $0x58c] ss:$12 sps:$4 sm:$0xff]  }
 0x130   : > { %1983 = vmatpush1.bf16.xpose.msra.mxu1 %v2853_v48  ;;  %v2916_v48 = vld [vmem:[%s3164_s8 + $0x4d0] ss:$12 sps:$4 sm:$0xff]  }
 0x131   : > { %1984 = vmatprep.subr.bf16.mxu1 %v2861_v50  ;;  %v1696_v49 = vsel %vm1538_vm1, %v2916_v48, 0  ;;  %v2920_v50 = vld [vmem:[%s3164_s8 + $0x578] ss:$12 sps:$4 sm:$0xff]  }
 0x136   : > { %1919 = vmatpush2.bf16.xpose.msra.mxu0 %v2856_v51  ;;  %v2912_v51 = vld [vmem:[%s3164_s8 + $0x588] ss:$12 sps:$4 sm:$0xff]  }
 0x137   : > { %1920 = vmatprep.subr.bf16.mxu0 %v2864_v40  ;;  %v2919_v40 = vld [vmem:[%s3164_s8 + $0x574] ss:$12 sps:$4 sm:$0xff]  }
 0x138   : > { %1985 = vmatpush1.bf16.xpose.msra.mxu1 %v2859_v52  ;;  %v2921_v52 = vld [vmem:[%s3164_s8 + $0x4b8] ss:$12 sps:$4 sm:$0xff]  }
 0x139   : > { %1986 = vmatprep.subr.bf16.mxu1 %v2867_v53  ;;  %v1693_v53 = vsel %vm1538_vm1, %v2921_v52, 0 }
 0x13e   : > { %1921 = vmatpush2.bf16.xpose.msra.mxu0 %v2862_v54  ;;  %v2925_v54 = vld [vmem:[%s3164_s8 + $0x560] ss:$12 sps:$4 sm:$0xff]  }
 0x13f   : > { %1922 = vmatprep.subr.bf16.mxu0 %v2870_v55  ;;  %v2917_v55 = vld [vmem:[%s3164_s8 + $0x570] ss:$12 sps:$4 sm:$0xff]  }
 0x140   : > { %1987 = vmatpush1.bf16.xpose.msra.mxu1 %v2865_v56  ;;  %v2924_v56 = vld [vmem:[%s3164_s8 + $0x55c] ss:$12 sps:$4 sm:$0xff]  }
 0x141   : > { %1988 = vmatprep.subr.bf16.mxu1 %v2873_v57  ;;  %v2926_v57 = vld [vmem:[%s3164_s8 + $0x4a0] ss:$12 sps:$4 sm:$0xff]  }
 0x146   : > { %1923 = vmatpush2.bf16.xpose.msra.mxu0 %v2868_v58  ;;  %v1690_v58 = vsel %vm1538_vm1, %v2926_v57, 0 }
 0x147   : > { %1924 = vmatprep.subr.bf16.mxu0 %v2876_v59  ;;  %v2930_v59 = vld [vmem:[%s3164_s8 + $0x548] ss:$12 sps:$4 sm:$0xff]  }
 0x148   : > { %1989 = vmatpush1.bf16.xpose.msra.mxu1 %v2871_v60  ;;  %v2922_v60 = vld [vmem:[%s3164_s8 + $0x558] ss:$12 sps:$4 sm:$0xff]  }
 0x149   : > { %1990 = vmatprep.subr.bf16.mxu1 %v2879_v61  ;;  %v2929_v61 = vld [vmem:[%s3164_s8 + $0x544] ss:$12 sps:$4 sm:$0xff]  }
 0x14e   : > { %1925 = vmatpush2.bf16.xpose.msra.mxu0 %v2874_v62  ;;  %v2931_v62 = vld [vmem:[%s3164_s8 + $0x488] ss:$12 sps:$4 sm:$0xff]  }
 0x14f   : > { %1926 = vmatprep.subr.bf16.mxu0 %v2882_v63  ;;  %v1687_v63 = vsel %vm1538_vm1, %v2931_v62, 0 }
 0x150   : > { %1991 = vmatpush1.bf16.xpose.msra.mxu1 %v2877_v0  ;;  %v2927_v0 = vld [vmem:[%s3164_s8 + $0x540] ss:$12 sps:$4 sm:$0xff]  }
 0x151   : > { %1992 = vmatprep.subr.bf16.mxu1 %v2885_v1  ;;  %v548_v1 = vsub.s32 2, %v3419_v8 }
 0x156   : > { %1927 = vmatpush2.bf16.xpose.msra.mxu0 %v2880_v2  ;;  %v552_v2 = vsub.s32 3, %v3419_v8 }
 0x157   : > { %1928 = vmatprep.subr.bf16.mxu0 %v2888_v3  ;;  %v549_v3 = vrot.slane %v3430_v13, %v548_v1 }
 0x158   : > { %1993 = vmatpush1.bf16.xpose.msra.mxu1 %v2883_v4 }
 0x159   : > { %1994 = vmatprep.subr.bf16.mxu1 %v2891_v5  ;;  %v553_v5 = vrot.slane %v3430_v13, %v552_v2 }
 0x15e   : > { %1929 = vmatpush2.bf16.xpose.msra.mxu0 %v2886_v7 }
 0x15f   : > { %2591 = vmatprep.subr.msk.bf16.mxu0 %vm1538_vm1, %v2895_v9 }
 0x160   : > { %1995 = vmatpush1.bf16.xpose.msra.mxu1 %v2889_v10 }
 0x161   : > { %1996 = vmatprep.subr.bf16.mxu1 %v2894_v11 }
 0x165   : > { %v1768_v22 = vpop.f32.mrf.mxu0  ;;  %1931 = vmatmul.mubr.bf16.vlgmr.msra.gmra.mxu0 %v3278_v18 }
 0x166   : > { %v1769_v25 = vadd.f32 %v1768_v22, %v541_v16  ;;  %2550 = vmatpush3.bf16.xpose.msra.mxu0 %v1708_v17  ;;  %2565 = vmatprep.mubr.msk.bf16.mxu0 %vm1538_vm1, %v3206_v23  ;;  %v556_v22 = vsub.s32 4, %v3419_v8 }
 0x167   : > { %v1770_v26 = vpop.f32.mrf.mxu0  ;;  %2592 = vmatprep.subr.msk.bf16.mxu0 %vm1538_vm1, %v2900_v19 }
 0x168   : > { %v3447_v28 = vadd.f32 %v3387_v43, %v1769_v25  ;;  %1997 = vmatpush2.bf16.xpose.msra.mxu1 %v2892_v20  ;;  %v1771_v29 = vadd.f32 %v1770_v26, %v545_v21  ;;  %v2911_v43 = vld [vmem:[%s3164_s8 + $0x4e8] ss:$12 sps:$4 sm:$0xff]   ;;  %v557_v25 = vrot.slane %v3430_v13, %v556_v22 }
 0x169   : > { %v1772_v30 = vpop.f32.mrf.mxu0  ;;  %1998 = vmatprep.subr.bf16.mxu1 %v2899_v24  ;;  %v560_v24 = vsub.s32 5, %v3419_v8 }
 0x16a   : > { %2120 = vst [vmem:[%s3178_s12] sm:$0xff] %v3447_v28  ;;  %v3452_v31 = vadd.f32 %v3392_v44, %v1771_v29  ;;  %v1699_v44 = vsel %vm1538_vm1, %v2911_v43, 0 }
 0x16b   : > { %v1773_v32 = vpop.f32.mrf.mxu0  ;;  %v561_v26 = vrot.slane %v3430_v13, %v560_v24 }
 0x16c   : > { %2121 = vst [vmem:[%s3178_s12 + $0x8] sm:$0xff] %v3452_v31 }
 0x16e   : > { %2552 = vmatpush3.bf16.xpose.msra.mxu0 %v1705_v33 }
 0x16f   : > { %2593 = vmatprep.subr.msk.bf16.mxu0 %vm1538_vm1, %v2905_v34 }
 0x170   : > { %1999 = vmatpush2.bf16.xpose.msra.mxu1 %v2897_v35 }
 0x171   : > { %2000 = vmatprep.subr.bf16.mxu1 %v2904_v36 }
 0x176   : > { %2554 = vmatpush3.bf16.xpose.msra.mxu0 %v1702_v38  ;;  %v568_v38 = vsub.s32 7, %v3419_v8 }
 0x177   : > { %2594 = vmatprep.subr.msk.bf16.mxu0 %vm1538_vm1, %v2910_v39  ;;  %v565_v39 = vrot.slane %v3430_v13, %v564_v37 }
 0x178   : > { %2001 = vmatpush2.bf16.xpose.msra.mxu1 %v2902_v41 }
 0x179   : > { %2002 = vmatprep.subr.bf16.mxu1 %v2909_v42  ;;  %v569_v42 = vrot.slane %v3430_v13, %v568_v38 }
 0x17e   : > { %2556 = vmatpush3.bf16.xpose.msra.mxu0 %v1699_v44 }
 0x17f   : > { %2595 = vmatprep.subr.msk.bf16.mxu0 %vm1538_vm1, %v2915_v45 }
 0x180   : > { %2003 = vmatpush2.bf16.xpose.msra.mxu1 %v2907_v46 }
 0x181   : > { %2004 = vmatprep.subr.bf16.mxu1 %v2914_v47 }
 0x186   : > { %2558 = vmatpush3.bf16.xpose.msra.mxu0 %v1696_v49 }
 0x187   : > { %2596 = vmatprep.subr.msk.bf16.mxu0 %vm1538_vm1, %v2920_v50 }
 0x188   : > { %2005 = vmatpush2.bf16.xpose.msra.mxu1 %v2912_v51 }
 0x189   : > { %2006 = vmatprep.subr.bf16.mxu1 %v2919_v40 }
 0x18e   : > { %2560 = vmatpush3.bf16.xpose.msra.mxu0 %v1693_v53 }
 0x18f   : > { %2597 = vmatprep.subr.msk.bf16.mxu0 %vm1538_vm1, %v2925_v54 }
 0x190   : > { %2007 = vmatpush2.bf16.xpose.msra.mxu1 %v2917_v55 }
 0x191   : > { %2008 = vmatprep.subr.bf16.mxu1 %v2924_v56 }
 0x196   : > { %2562 = vmatpush3.bf16.xpose.msra.mxu0 %v1690_v58  ;;  %v3048_v58 = vmov 0  }
 0x197   : > { %2598 = vmatprep.subr.msk.bf16.mxu0 %vm1538_vm1, %v2930_v59  ;;  %2675 = vset.pattern.permute.xlu0 %v3048_v58  ;;  %v2062_v59 = vld [vmem:[#allocation2] sm:$0xff] }
 0x198   : > { %2009 = vmatpush2.bf16.xpose.msra.mxu1 %v2922_v60 }
 0x199   : > { %2010 = vmatprep.subr.bf16.mxu1 %v2929_v61 }
 0x19e   : > { %2564 = vmatpush3.bf16.xpose.msra.mxu0 %v1687_v63 }
 0x1a0   : > { %2011 = vmatpush2.bf16.xpose.msra.mxu1 %v2927_v0 }
 0x1a5   : > { %v1891_v4 = vpop.f32.mrf.mxu0  ;;  %2566 = vmatmul.mubr.msk.bf16.vlgmr.msra.gmra.mxu0 %vm1538_vm1, %v3206_v23 }
 0x1a7   : > { %v1850_v6 = vpop.f32.mrf.mxu1  ;;  %2013 = vmatmul.mubr.bf16.vlgmr.msra.gmra.mxu1 %v3278_v18  ;;  %v1893_v7 = vpop.f32.mrf.mxu0 }
 0x1a8   : > { %v1851_v9 = vadd.f32 %v1850_v6, %v549_v3 }
 0x1a9   : > { %v1852_v10 = vpop.f32.mrf.mxu1  ;;  %v1895_v11 = vpop.f32.mrf.mxu0 }
 0x1aa   : > { %v3501_v12 = vadd.f32 %v1891_v4, %v1851_v9  ;;  %v1853_v14 = vadd.f32 %v1852_v10, %v553_v5 }
 0x1ab   : > { %v1854_v15 = vpop.f32.mrf.mxu1  ;;  %v1896_v16 = vpop.f32.mrf.mxu0 }
 0x1ac   : > { %2122 = vst [vmem:[%s3178_s12 + $0x10] sm:$0xff] %v3501_v12  ;;  %v3505_v17 = vadd.f32 %v1893_v7, %v1853_v14 }
 0x1ad   : > { %v1855_v19 = vpop.f32.mrf.mxu1 }
 0x1ae   : > { %2123 = vst [vmem:[%s3178_s12 + $0x18] sm:$0xff] %v3505_v17 }
 0x1e7   : > { %v1973_v23 = vpop.f32.mrf.mxu1 }
 0x1e9   : > { %v1975_v20 = vpop.f32.mrf.mxu1 }
 0x1eb   : > { %v1977_v18 = vpop.f32.mrf.mxu1 }
 0x1ed   : > { %v1978_v21 = vpop.f32.mrf.mxu1 }
 0x225   : > { %v1932_v27 = vpop.f32.mrf.mxu0 }
 0x226   : > { %v1933_v29 = vadd.f32 %v1932_v27, %v557_v25 }
 0x227   : > { %v1934_v30 = vpop.f32.mrf.mxu0 }
 0x228   : > { %v1974_v32 = vadd.f32 %v1973_v23, %v1933_v29  ;;  %v1935_v33 = vadd.f32 %v1934_v30, %v561_v26 }
 0x229   : > { %v1936_v34 = vpop.f32.mrf.mxu0 }
 0x22a   : > { %2124 = vst [vmem:[%s3178_s12 + $0x20] sm:$0xff] %v1974_v32  ;;  %v1976_v35 = vadd.f32 %v1975_v20, %v1935_v33  ;;  %v2063_v53 = vmax.f32 %v3447_v28, %v1974_v32 }
 0x22b   : > { %v1937_v36 = vpop.f32.mrf.mxu0 }
 0x22c   : > { %2125 = vst [vmem:[%s3178_s12 + $0x28] sm:$0xff] %v1976_v35  ;;  %v2064_v52 = vmax.f32 %v3452_v31, %v1976_v35 }
 0x22e   : > { %v2067_v55 = vmax.f32 %v2063_v53, %v2064_v52 }
 0x265   : > { %v2055_v41 = vpop.f32.mrf.mxu0 }
 0x267   : > { %v2014_v43 = vpop.f32.mrf.mxu1  ;;  %v2057_v44 = vpop.f32.mrf.mxu0 }
 0x268   : > { %v2015_v45 = vadd.f32 %v2014_v43, %v565_v39 }
 0x269   : > { %v2016_v46 = vpop.f32.mrf.mxu1  ;;  %v2059_v47 = vpop.f32.mrf.mxu0 }
 0x26a   : > { %v2056_v48 = vadd.f32 %v2055_v41, %v2015_v45  ;;  %v2017_v49 = vadd.f32 %v2016_v46, %v569_v42 }
 0x26b   : > { %v2018_v50 = vpop.f32.mrf.mxu1  ;;  %v2060_v51 = vpop.f32.mrf.mxu0 }
 0x26c   : > { %2126 = vst [vmem:[%s3178_s12 + $0x30] sm:$0xff] %v2056_v48  ;;  %v2058_v40 = vadd.f32 %v2057_v44, %v2017_v49  ;;  %v2065_v54 = vmax.f32 %v3501_v12, %v2056_v48 }
 0x26d   : > { %v2019_v8 = vpop.f32.mrf.mxu1 }
 0x26e   : > { %2127 = vst [vmem:[%s3178_s12 + $0x38] sm:$0xff] %v2058_v40  ;;  %v2066_v13 = vmax.f32 %v3505_v17, %v2058_v40 }
 0x270   : > { %v2068_v56 = vmax.f32 %v2065_v54, %v2066_v13 }
 0x272   : > { %v2069_v57 = vmax.f32 %v2067_v55, %v2068_v56 }
 0x274   : > { %2070 = vmax.xlane.f32.xlu0 %v2069_v57 }
 0x2fd   : > { %v2071_v60 = vpop.xlane.xlu0 %2070 }
 0x2fe   : > { %v2072_v61 = vmax.f32 %v2062_v59, %v2071_v60 }
 0x300   : > { %v2074_v62 = vsub.f32 %v2062_v59, %v2072_v61  ;;  %2119 = vst.msk [vmem:[#allocation2] sm:$0xff] %vm2117_vm2, %v2072_v61  ;;  %2080 = vperm.xlu0 %2675, %v2072_v61  }
 0x302   : > { %v2075_v33 = vmul.f32 1.442695, %v2074_v62 }
 0x37b   : > { %v2081_v63 = vpop.permute.xlu0 %2080 }
 0x37c   : > { %v2083_v0 = vsub.f32 %v3447_v28, %v2081_v63  ;;  %v2084_v1 = vsub.f32 %v3452_v31, %v2081_v63  ;;  %v2085_v2 = vsub.f32 %v3501_v12, %v2081_v63  ;;  %v2086_v3 = vsub.f32 %v3505_v17, %v2081_v63 }
 0x37d   : > { %v2087_v6 = vsub.f32 %v1974_v32, %v2081_v63  ;;  %v2088_v9 = vsub.f32 %v1976_v35, %v2081_v63  ;;  %v2089_v11 = vsub.f32 %v2056_v48, %v2081_v63  ;;  %v2090_v28 = vsub.f32 %v2058_v40, %v2081_v63  ;;  %v2073_v35 = vld [vmem:[#allocation3] sm:$0xff] }
 0x37e   : > { %v2091_v4 = vmul.f32 1.442695, %v2083_v0  ;;  %v2093_v5 = vmul.f32 1.442695, %v2084_v1  ;;  %v2095_v7 = vmul.f32 1.442695, %v2085_v2 }
 0x37f   : > { %v2097_v10 = vmul.f32 1.442695, %v2086_v3  ;;  %v2099_v14 = vmul.f32 1.442695, %v2087_v6  ;;  %v2101_v15 = vmul.f32 1.442695, %v2088_v9 }
 0x380   : > { %2932 = vpow2.f32 %v2091_v4  ;;  %v2103_v31 = vmul.f32 1.442695, %v2089_v11  ;;  %v2105_v12 = vmul.f32 1.442695, %v2090_v28 }
 0x381   : > { %2934 = vpow2.f32 %v2093_v5 }
 0x382   : > { %2936 = vpow2.f32 %v2095_v7 }
 0x383   : > { %2938 = vpow2.f32 %v2097_v10 }
 0x384   : > { %2940 = vpow2.f32 %v2099_v14 }
 0x385   : > { %2942 = vpow2.f32 %v2101_v15 }
 0x386   : > { %2944 = vpow2.f32 %v2103_v31 }
 0x387   : > { %2946 = vpow2.f32 %v2105_v12 }
 0x388   : > { %2948 = vpow2.f32 %v2075_v33 }
 0x38d   : > { %v2933_v16 = vpop.eup %2932 }
 0x38e   : > { %v2935_v17 = vpop.eup %2934 }
 0x38f   : > { %v2107_v19 = vadd.f32 %v2935_v17, %v2933_v16  ;;  %v2937_v23 = vpop.eup %2936 }
 0x390   : > { %v2939_v18 = vpop.eup %2938 }
 0x391   : > { %v2108_v20 = vadd.f32 %v2937_v23, %v2107_v19  ;;  %v2941_v22 = vpop.eup %2940 }
 0x392   : > { %v2943_v25 = vpop.eup %2942 }
 0x393   : > { %v2109_v21 = vadd.f32 %v2939_v18, %v2108_v20  ;;  %v2945_v27 = vpop.eup %2944 }
 0x394   : > { %v2947_v30 = vpop.eup %2946 }
 0x395   : > { %v2110_v24 = vadd.f32 %v2941_v22, %v2109_v21  ;;  %v2949_v34 = vpop.eup %2948 }
 0x396   : > { %v2077_v36 = vmul.f32 %v2949_v34, %v2073_v35 }
 0x397   : > { %v2111_v26 = vadd.f32 %v2943_v25, %v2110_v24 }
 0x399   : > { %v2112_v29 = vadd.f32 %v2945_v27, %v2111_v26 }
 0x39b   : > { %v2113_v32 = vadd.f32 %v2947_v30, %v2112_v29 }
 0x39d   : > { %2114 = vadd.xlane.f32.xlu1 %v2113_v32 }
 0x425   : > { %2131 = sbr.rel (%p2488_p2) target bundleno = 1092 (0x444), region = 40 }
 0x426   : > { %v2115_v37 = vpop.xlane.xlu1 %2114 }
 0x427   : > { %v2116_v38 = vadd.f32 %v2115_v37, %v2077_v36 }
 0x429   : > { %2118 = vst.msk [vmem:[#allocation3] sm:$0xff] %vm2117_vm2, %v2116_v38 }
 0x42a   : > { %v2132_v42 = vld [vmem:[#allocation2] sm:$0xff] }
 0x430   : > { %v2133_v39 = vld [vmem:[#allocation3] sm:$0xff] }
 0x431   : > { %2950 = vlog2.f32 %v2133_v39 }
 0x43e   : > { %v2951_v41 = vpop.eup %2950 }
 0x43f   : > { %v2135_v43 = vmul.f32 0.6931472, %v2951_v41 }
 0x441   : > { %v2136_v44 = vadd.f32 %v2135_v43, %v2132_v42 }
 0x443   : > { %2137 = vst.msk [vmem:[%s3169_s21] sm:$0xff] %vm2117_vm2, %v2136_v44 }
 0x444 PF: > { %s2491_s20 = sshll.u32 %s3032_s19, 4  ;;  %s2159_s8 = sshll.u32 %s3178_s12, 4  ;;  %s2160_s8 = int_to_ptr.vmem [resolvable:$true] %s2159_s8 }
 0x445   : > { %s2155_s7 = sadd.s32 %s2491_s20, %s3153_s13  ;;  %s3599_s24 = sand.u32 1, %s3020_s16  }
 0x446   : > { %s2492_s18 = sshll.u32 %s2155_s7, 7  ;;  %s2139_s27 = scalar_lea.sflag [#allocation5], %s3599_s24 }
 0x447   : > { %s2157_s14 = scalar_lea.hbm %s3585_s3, %s2492_s18  ;;  %s2952_s30 = scalar_lea.vmem %s2160_s8, 1024 }
 0x448   : > { %p2953_p4 = scmp.ne.s32.totalorder %s2160_s8, %s2952_s30  ;;  %s3049_s21 = smov [#allocation4]  }
 0x449   : > { %s2956_s5 = sshll.u32 %s3049_s21, 4  ;;  %s2957_s5 = int_to_ptr.vmem [resolvable:$false] %s2956_s5 }
 0x44a   : > { %p2954_p5 = pnand %p2953_p4, %p3126_p3  ;;  %s2958_s6 = scalar_lea.vmem %s2957_s5, 2048 }
 0x44b   : > { %p2959_p7 = scmp.lt.s32.totalorder %s2160_s8, %s2957_s5  ;;  %p2960_p9 = scmp.lt.s32.totalorder %s2958_s6, %s2952_s30 }
 0x44c   : > { %p2955_p6 = pneg %p2954_p5 }
 0x44d   : > { %p2961_p10 = por %p2960_p9, %p2959_p7 }
 0x44f   : > { %p2962_p11 = pnand %p2961_p10, %p2955_p6 }
 0x451   : > { %2965 = shalt.err (!%p2962_p11)
}
 0x452   : > { %s2966_s19 = scalar_lea.hbm %s2157_s14, 1024  ;;  %s2970_s23 = scalar_lea.hbm %s3585_s3, 4096 }
 0x453   : > { %p2967_p12 = scmp.ne.s32.totalorder %s2157_s14, %s2966_s19  ;;  %p2971_p1 = scmp.lt.s32.totalorder %s2157_s14, %s3585_s3 }
 0x454   : > { %p2972_p2 = scmp.lt.s32.totalorder %s2970_s23, %s2966_s19 }
 0x455   : > { %p2968_p13 = pnand %p2967_p12, %p3126_p3 }
 0x456   : > { %p2973_p4 = por %p2972_p2, %p2971_p1 }
 0x457   : > { %p2969_p0 = pneg %p2968_p13 }
 0x459   : > { %p2974_p5 = pnand %p2973_p4, %p2969_p0 }
 0x45b   : > { %2977 = shalt.err (!%p2974_p5)
}
 0x45c   : > { %2601 = dma.vmem_to_hbm [thread:$0]  (%p3126_p3), %s2160_s8, 1024, %s2157_s14, %s2139_s27  }
 0x45d PF: > { %p2607_p6 = scmp.ge.s32.totalorder %s3044_s22, 2  ;;  %s2174_s26 = sand.u32 1, %s3016_s15  }
 0x45e   : > { %s2175_s20 = scalar_lea.sflag [#allocation5], %s2174_s26 }
 0x45f   : > { %p2604_p7 = pnand %p2607_p6, %p3135_p8 }
 0x461   : > { %p2605_p9 = pneg %p2604_p7 }
 0x463   : > { %3011 = dma.done.wait (%p2605_p9), %s2175_s20, 1024  }
 0x464   : > { %3013 = vsyncadd (%p2605_p9), %s2175_s20, 4294966272  ;;  %s18_s22 = sadd.s32 1, %s3044_s22   ;;  %s3600_s7 = sld [smem:[#allocation11_spill]] }
 0x465   : > { %p15_p10 = scmp.ge.s32.totalorder %s18_s22, 6   ;;  %s3601_s18 = sld [smem:[#allocation7_spill]] }
 0x466   : > { %s3602_s19 = sld [smem:[#allocation8_spill]]  ;;  %s3605_s15 = smov %s3020_s16 }
 0x467   : > { %s3603_s20 = sld [smem:[#allocation9_spill]]  ;;  %s3606_s16 = smov %s3024_s17 }
 0x468   : > { %s3604_s21 = sld [smem:[#allocation10_spill]]  ;;  %17 = sbr.rel (!%p15_p10) target bundleno = 5 (0x5), region = 93 }
 0x46a   : > { %s3607_s17 = smov %s3600_s7 }
 0x46d   :  { %2187 = vsyncpa [#allocation5], 1 }
 0x46e   :  { %2189 = vsyncpa [#allocation5 + $0x1], 1 }

</bundles_post_ra>
